<compile_context>
chip_gen: v5e
topology: v5e:2x2
jax: 0.10.0
libtpu: 0.0.40
codegen_flags: <defaults>
</compile_context>

<pallas_src>
import jax
import jax.numpy as jnp
from jax.experimental import pallas as pl
from jax.experimental.pallas import tpu as pltpu

H, W = 10, 6                  # input spatial (so 16*8*4 = 512 matches fc1)
KH = KW = 3
HO, WO = H - KH + 1, W - KW + 1           # 8, 4
COUT = 16
FLAT = COUT * HO * WO                     # 512
NCLS = 10
NCLS_PAD = 128                            # lane-dense output slab
KIN_PAD = 64                              # 60 -> 64 padded first contraction
HID2_PAD = 128                            # fc2 output 64 -> 128 padded
MAX_BLOCK_B = 2048


def _round_up(n, m):
    return (n + m - 1) // m * m


# ------------------------- fused Pallas kernel -------------------------

def fused_net_kernel(x_ref, wc_ref, bc_ref, w1_ref, b1_ref,
                     w2_ref, b2_ref, w3_ref, b3_ref, o_ref):
    # x:  (Bt, 64)    bf16     wc: (64, 512)   bf16   bc: (1, 512) f32
    # w1: (512, 128)  bf16     b1: (1, 128)    f32
    # w2: (128, 128)  bf16     b2: (1, 128)    f32    (cols 64: are zero)
    # w3: (128, 128)  bf16     b3: (1, 128)    f32    (-1e9 in padded class slots)
    # o:  (Bt, 128)   bf16
    conv = jnp.dot(x_ref[...], wc_ref[...], preferred_element_type=jnp.float32)
    conv = jnp.maximum(conv + bc_ref[...], 0.0).astype(jnp.bfloat16)

    h1 = jnp.dot(conv, w1_ref[...], preferred_element_type=jnp.float32)
    h1 = jnp.maximum(h1 + b1_ref[...], 0.0).astype(jnp.bfloat16)

    h2 = jnp.dot(h1, w2_ref[...], preferred_element_type=jnp.float32)
    h2 = jnp.maximum(h2 + b2_ref[...], 0.0).astype(jnp.bfloat16)

    logits = jnp.dot(h2, w3_ref[...], preferred_element_type=jnp.float32)
    logits = logits + b3_ref[...]                  # f32, padded lanes get -1e9

    m = jnp.max(logits, axis=1, keepdims=True)
    e = jnp.exp(logits - m)                        # padded lanes underflow to 0
    denom = jnp.sum(e, axis=1, keepdims=True)
    o_ref[...] = (e * pl.reciprocal(denom, approx=True)).astype(o_ref.dtype)


# ------------------------- one-time parameter preparation -------------------------

def _conv_as_matrix(wc):
    """(16,1,3,3) conv weight -> (60, 512) matrix mapping the flattened
    (1,10,6) input to the valid-conv output flattened in PyTorch NCHW order
    (column index = c*32 + oh*4 + ow)."""
    oh = jnp.arange(HO)
    ow = jnp.arange(WO)
    kh = jnp.arange(KH)
    kw = jnp.arange(KW)
    in_idx = ((oh[:, None, None, None] + kh[None, None, :, None]) * W
              + (ow[None, :, None, None] + kw[None, None, None, :]))   # (HO,WO,KH,KW)
    onehot = jax.nn.one_hot(in_idx, H * W, dtype=jnp.float32)           # (...,60)
    wmat = jnp.einsum('opkli,ckl->icop', onehot, wc[:, 0].astype(jnp.float32))
    return wmat.reshape(H * W, FLAT)                                    # (60, 512)


def prepare_params(params):
    """Run ONCE (outside the jitted forward).  Returns ready-to-use arrays."""
    wc, bc, w1, b1, w2, b2, w3, b3 = params

    # Conv folded to a dense matrix; contraction dim zero-padded 60 -> 64.
    w_conv = _conv_as_matrix(wc)
    w_conv = jnp.zeros((KIN_PAD, FLAT), jnp.float32).at[:H * W, :].set(w_conv)
    b_conv = jnp.repeat(bc.astype(jnp.float32), HO * WO).reshape(1, FLAT)

    # fc1: (128,512) -> (512,128)
    w1t = w1.T.astype(jnp.bfloat16)
    b1r = b1.reshape(1, 128).astype(jnp.float32)

    # fc2: (64,128) -> (128,64) padded to (128,128); zero bias in pad cols.
    w2p = jnp.zeros((128, HID2_PAD), jnp.float32).at[:, :64].set(w2.T)
    b2p = jnp.zeros((1, HID2_PAD), jnp.float32).at[0, :64].set(b2)

    # fc3: (10,64) -> (64,10) padded to (128,128); -1e9 bias in padded classes.
    w3p = jnp.zeros((HID2_PAD, NCLS_PAD), jnp.float32).at[:64, :NCLS].set(w3.T)
    b3p = jnp.full((1, NCLS_PAD), -1e9, jnp.float32).at[0, :NCLS].set(b3)

    return (w_conv.astype(jnp.bfloat16), b_conv,
            w1t, b1r,
            w2p.astype(jnp.bfloat16), b2p,
            w3p.astype(jnp.bfloat16), b3p)


# ------------------------- wrapper -------------------------

@jax.jit
def custom_net_forward(x, prepped):
    """x: (B, 1, 10, 6) float32 (NCHW); prepped: output of prepare_params."""
    B = x.shape[0]

    # Batch tiling: always at least 2 grid steps (so v7x shards across both
    # TensorCores); block_b derived from B, capped at 2048 rows, multiple of 8.
    n_blocks = max(2, pl.cdiv(B, MAX_BLOCK_B))
    block_b = _round_up(pl.cdiv(B, n_blocks), 8)
    b_pad = n_blocks * block_b

    x_flat = x.reshape(B, H * W).astype(jnp.bfloat16)
    x_flat = jnp.pad(x_flat, ((0, b_pad - B), (0, KIN_PAD - H * W)))

    const = lambda i: (0, 0)
    weight_elems = (KIN_PAD * FLAT + FLAT * 128 + 128 * HID2_PAD
                    + HID2_PAD * NCLS_PAD)
    flops = 2 * b_pad * weight_elems
    bytes_accessed = (b_pad * KIN_PAD * 2          # bf16 input
                      + b_pad * NCLS_PAD * 2       # bf16 output
                      + weight_elems * 2           # bf16 weights
                      + (FLAT + 128 + HID2_PAD + NCLS_PAD) * 4)  # f32 biases

    out = pl.pallas_call(
        fused_net_kernel,
        out_shape=jax.ShapeDtypeStruct((b_pad, NCLS_PAD), jnp.bfloat16),
        grid_spec=pltpu.PrefetchScalarGridSpec(
            num_scalar_prefetch=0,
            grid=(n_blocks,),
            in_specs=[
                pl.BlockSpec((block_b, KIN_PAD), lambda i: (i, 0)),   # x tile
                pl.BlockSpec((KIN_PAD, FLAT), const),                 # conv-as-matrix
                pl.BlockSpec((1, FLAT), const),                       # conv bias
                pl.BlockSpec((FLAT, 128), const),                     # fc1 w
                pl.BlockSpec((1, 128), const),                        # fc1 b
                pl.BlockSpec((128, HID2_PAD), const),                 # fc2 w (padded)
                pl.BlockSpec((1, HID2_PAD), const),                   # fc2 b (padded)
                pl.BlockSpec((HID2_PAD, NCLS_PAD), const),            # fc3 w (padded)
                pl.BlockSpec((1, NCLS_PAD), const),                   # fc3 b (padded)
            ],
            out_specs=pl.BlockSpec((block_b, NCLS_PAD), lambda i: (i, 0)),
        ),
        compiler_params=pltpu.CompilerParams(
            dimension_semantics=("parallel",),   # v7x: both TCs; no-op on v5e/v6e
            vmem_limit_bytes=32 * 1024 * 1024,
        ),
        cost_estimate=pl.CostEstimate(
            flops=flops, transcendentals=b_pad * NCLS_PAD,
            bytes_accessed=bytes_accessed),
    )(x_flat, *prepped)

    return out[:B, :NCLS].astype(jnp.float32)


# ------------------------- reference & init -------------------------

def reference_forward(x, params):
    wc, bc, w1, b1, w2, b2, w3, b3 = params
    conv = jax.lax.conv_general_dilated(
        x, wc, window_strides=(1, 1), padding='VALID',
        dimension_numbers=('NCHW', 'OIHW', 'NCHW'))
    conv = jnp.maximum(conv + bc[None, :, None, None], 0.0)
    f = conv.reshape(x.shape[0], FLAT)
    h1 = jnp.maximum(f @ w1.T + b1, 0.0)
    h2 = jnp.maximum(h1 @ w2.T + b2, 0.0)
    return jax.nn.softmax(h2 @ w3.T + b3, axis=1)


def init_params(key):
    """Deterministic parameter init with the shapes from CustomNet.__init__."""
    ks = jax.random.split(key, 8)

    def u(k, shape, fan_in):
        bound = 1.0 / jnp.sqrt(fan_in)
        return jax.random.uniform(k, shape, jnp.float32, -bound, bound)

    wc = u(ks[0], (16, 1, 3, 3), 9)       # conv1.weight
    bc = u(ks[1], (16,), 9)               # conv1.bias
    w1 = u(ks[2], (128, 512), 512)        # fc1.weight
    b1 = u(ks[3], (128,), 512)            # fc1.bias
    w2 = u(ks[4], (64, 128), 128)         # fc2.weight
    b2 = u(ks[5], (64,), 128)             # fc2.bias
    w3 = u(ks[6], (10, 64), 64)           # fc3.weight
    b3 = u(ks[7], (10,), 64)              # fc3.bias
    return (wc, bc, w1, b1, w2, b2, w3, b3)


if __name__ == "__main__":
    key = jax.random.PRNGKey(0)
    pkey, xkey = jax.random.split(key)
    params = init_params(pkey)

    # One-time parameter preparation, hoisted out of the per-call path.
    prepped = prepare_params(params)
    prepped = jax.block_until_ready(prepped)

    # Input must be (B, 1, 10, 6) so the 3x3 valid conv yields (B, 16, 8, 4),
    # which flattens to 16*8*4 = 512 as required by fc1.
    B = 2
    x = jax.random.normal(xkey, (B, 1, 10, 6), dtype=jnp.float32)

    out = custom_net_forward(x, prepped)
    out = jax.block_until_ready(out)
    ref = reference_forward(x, params)

    assert out.shape == (B, 10)
    assert bool(jnp.all(jnp.isfinite(out)))
    # bf16 output + approx reciprocal -> rows sum to 1 within ~1e-2
    assert bool(jnp.allclose(jnp.sum(out, axis=1), 1.0, atol=1e-2))
    # bf16 matmuls / output + approx reciprocal vs f32 reference
    assert bool(jnp.allclose(out, ref, atol=2e-2))
    print("KERNEL_OK")
</pallas_src>

<mosaic_0001>
module attributes {stable_mosaic.version = 11 : i64} {
  func.func @fused_net_kernel(%arg0: i32, %arg1: memref<8x64xbf16, #tpu.memory_space<vmem>>, %arg2: memref<64x512xbf16, #tpu.memory_space<vmem>>, %arg3: memref<1x512xf32, #tpu.memory_space<vmem>>, %arg4: memref<512x128xbf16, #tpu.memory_space<vmem>>, %arg5: memref<1x128xf32, #tpu.memory_space<vmem>>, %arg6: memref<128x128xbf16, #tpu.memory_space<vmem>>, %arg7: memref<1x128xf32, #tpu.memory_space<vmem>>, %arg8: memref<128x128xbf16, #tpu.memory_space<vmem>>, %arg9: memref<1x128xf32, #tpu.memory_space<vmem>>, %arg10: memref<8x128xbf16, #tpu.memory_space<vmem>>) attributes {dimension_semantics = [#tpu.dimension_semantics<parallel>], iteration_bounds = array<i64: 2>, scalar_prefetch = 0 : i64, scratch_operands = 0 : i64, tpu.core_type = #tpu.core_type<tc>, window_params = [{transform_indices = @transform_0, window_bounds = array<i64: 8, 64>}, {pipeline_mode = #tpu.pipeline_mode<synchronous>, transform_indices = @transform_1, window_bounds = array<i64: 64, 512>}, {pipeline_mode = #tpu.pipeline_mode<synchronous>, transform_indices = @transform_2, window_bounds = array<i64: 1, 512>}, {pipeline_mode = #tpu.pipeline_mode<synchronous>, transform_indices = @transform_3, window_bounds = array<i64: 512, 128>}, {pipeline_mode = #tpu.pipeline_mode<synchronous>, transform_indices = @transform_4, window_bounds = array<i64: 1, 128>}, {pipeline_mode = #tpu.pipeline_mode<synchronous>, transform_indices = @transform_5, window_bounds = array<i64: 128, 128>}, {pipeline_mode = #tpu.pipeline_mode<synchronous>, transform_indices = @transform_6, window_bounds = array<i64: 1, 128>}, {pipeline_mode = #tpu.pipeline_mode<synchronous>, transform_indices = @transform_7, window_bounds = array<i64: 128, 128>}, {pipeline_mode = #tpu.pipeline_mode<synchronous>, transform_indices = @transform_8, window_bounds = array<i64: 1, 128>}, {transform_indices = @transform_9, window_bounds = array<i64: 8, 128>}]} {
    %c0 = arith.constant 0 : index
    %c0_0 = arith.constant 0 : index
    %0 = vector.load %arg1[%c0, %c0_0] : memref<8x64xbf16, #tpu.memory_space<vmem>>, vector<8x64xbf16>
    %c0_1 = arith.constant 0 : index
    %c0_2 = arith.constant 0 : index
    %1 = vector.load %arg2[%c0_1, %c0_2] : memref<64x512xbf16, #tpu.memory_space<vmem>>, vector<64x512xbf16>
    %cst = arith.constant dense<0.000000e+00> : vector<8x512xf32>
    %2 = tpu.matmul %0, %1, %cst {dimension_numbers = #tpu.dot_dimension_numbers<[1], [0], [0], [1], [0, 0, 1, 1], [], []>} : vector<8x64xbf16>, vector<64x512xbf16>, vector<8x512xf32> -> vector<8x512xf32>
    %c0_3 = arith.constant 0 : index
    %c0_4 = arith.constant 0 : index
    %3 = vector.load %arg3[%c0_3, %c0_4] : memref<1x512xf32, #tpu.memory_space<vmem>>, vector<1x512xf32>
    %4 = vector.broadcast %3 : vector<1x512xf32> to vector<8x512xf32>
    %5 = arith.addf %2, %4 : vector<8x512xf32>
    %cst_5 = arith.constant 0.000000e+00 : f32
    %6 = vector.broadcast %cst_5 : f32 to vector<8x512xf32>
    %7 = arith.maximumf %5, %6 : vector<8x512xf32>
    %8 = arith.truncf %7 : vector<8x512xf32> to vector<8x512xbf16>
    %c0_6 = arith.constant 0 : index
    %c0_7 = arith.constant 0 : index
    %9 = vector.load %arg4[%c0_6, %c0_7] : memref<512x128xbf16, #tpu.memory_space<vmem>>, vector<512x128xbf16>
    %cst_8 = arith.constant dense<0.000000e+00> : vector<8x128xf32>
    %10 = tpu.matmul %8, %9, %cst_8 {dimension_numbers = #tpu.dot_dimension_numbers<[1], [0], [0], [1], [0, 0, 1, 1], [], []>} : vector<8x512xbf16>, vector<512x128xbf16>, vector<8x128xf32> -> vector<8x128xf32>
    %c0_9 = arith.constant 0 : index
    %c0_10 = arith.constant 0 : index
    %11 = vector.load %arg5[%c0_9, %c0_10] : memref<1x128xf32, #tpu.memory_space<vmem>>, vector<1x128xf32>
    %12 = vector.broadcast %11 : vector<1x128xf32> to vector<8x128xf32>
    %13 = arith.addf %10, %12 : vector<8x128xf32>
    %cst_11 = arith.constant 0.000000e+00 : f32
    %14 = vector.broadcast %cst_11 : f32 to vector<8x128xf32>
    %15 = arith.maximumf %13, %14 : vector<8x128xf32>
    %16 = arith.truncf %15 : vector<8x128xf32> to vector<8x128xbf16>
    %c0_12 = arith.constant 0 : index
    %c0_13 = arith.constant 0 : index
    %17 = vector.load %arg6[%c0_12, %c0_13] : memref<128x128xbf16, #tpu.memory_space<vmem>>, vector<128x128xbf16>
    %cst_14 = arith.constant dense<0.000000e+00> : vector<8x128xf32>
    %18 = tpu.matmul %16, %17, %cst_14 {dimension_numbers = #tpu.dot_dimension_numbers<[1], [0], [0], [1], [0, 0, 1, 1], [], []>} : vector<8x128xbf16>, vector<128x128xbf16>, vector<8x128xf32> -> vector<8x128xf32>
    %c0_15 = arith.constant 0 : index
    %c0_16 = arith.constant 0 : index
    %19 = vector.load %arg7[%c0_15, %c0_16] : memref<1x128xf32, #tpu.memory_space<vmem>>, vector<1x128xf32>
    %20 = vector.broadcast %19 : vector<1x128xf32> to vector<8x128xf32>
    %21 = arith.addf %18, %20 : vector<8x128xf32>
    %cst_17 = arith.constant 0.000000e+00 : f32
    %22 = vector.broadcast %cst_17 : f32 to vector<8x128xf32>
    %23 = arith.maximumf %21, %22 : vector<8x128xf32>
    %24 = arith.truncf %23 : vector<8x128xf32> to vector<8x128xbf16>
    %c0_18 = arith.constant 0 : index
    %c0_19 = arith.constant 0 : index
    %25 = vector.load %arg8[%c0_18, %c0_19] : memref<128x128xbf16, #tpu.memory_space<vmem>>, vector<128x128xbf16>
    %cst_20 = arith.constant dense<0.000000e+00> : vector<8x128xf32>
    %26 = tpu.matmul %24, %25, %cst_20 {dimension_numbers = #tpu.dot_dimension_numbers<[1], [0], [0], [1], [0, 0, 1, 1], [], []>} : vector<8x128xbf16>, vector<128x128xbf16>, vector<8x128xf32> -> vector<8x128xf32>
    %c0_21 = arith.constant 0 : index
    %c0_22 = arith.constant 0 : index
    %27 = vector.load %arg9[%c0_21, %c0_22] : memref<1x128xf32, #tpu.memory_space<vmem>>, vector<1x128xf32>
    %28 = vector.broadcast %27 : vector<1x128xf32> to vector<8x128xf32>
    %29 = arith.addf %26, %28 : vector<8x128xf32>
    %cst_23 = arith.constant dense<0xFF800000> : vector<8xf32>
    %30 = vector.multi_reduction <maximumf>, %29, %cst_23 [1] : vector<8x128xf32> to vector<8xf32>
    %31 = vector.shape_cast %30 : vector<8xf32> to vector<8x1xf32>
    %32 = vector.broadcast %31 : vector<8x1xf32> to vector<8x128xf32>
    %33 = arith.subf %29, %32 : vector<8x128xf32>
    %34 = math.exp %33 : vector<8x128xf32>
    %cst_24 = arith.constant dense<0.000000e+00> : vector<8xf32>
    %35 = vector.multi_reduction <add>, %34, %cst_24 [1] : vector<8x128xf32> to vector<8xf32>
    %36 = vector.shape_cast %35 : vector<8xf32> to vector<8x1xf32>
    %37 = tpu.reciprocal %36 {approx = true} : vector<8x1xf32> -> vector<8x1xf32>
    %38 = vector.broadcast %37 : vector<8x1xf32> to vector<8x128xf32>
    %39 = arith.mulf %34, %38 : vector<8x128xf32>
    %40 = arith.truncf %39 : vector<8x128xf32> to vector<8x128xbf16>
    %c0_25 = arith.constant 0 : index
    %c0_26 = arith.constant 0 : index
    %41 = vector.load %arg10[%c0_25, %c0_26] : memref<8x128xbf16, #tpu.memory_space<vmem>>, vector<8x128xbf16>
    tpu.vector_store %arg10[%c0_25, %c0_26], %40 {strides = array<i32>} : memref<8x128xbf16, #tpu.memory_space<vmem>>, vector<8x128xbf16>,
    return
  }
  func.func @transform_0(%arg0: i32) -> (i32, i32) {
    %c0_i32 = arith.constant 0 : i32
    %c0_i32_0 = arith.constant 0 : i32
    return %arg0, %c0_i32 : i32, i32
  }
  func.func @transform_1(%arg0: i32) -> (i32, i32) {
    %c0_i32 = arith.constant 0 : i32
    %c0_i32_0 = arith.constant 0 : i32
    %c0_i32_1 = arith.constant 0 : i32
    return %c0_i32, %c0_i32_0 : i32, i32
  }
  func.func @transform_2(%arg0: i32) -> (i32, i32) {
    %c0_i32 = arith.constant 0 : i32
    %c0_i32_0 = arith.constant 0 : i32
    %c0_i32_1 = arith.constant 0 : i32
    return %c0_i32, %c0_i32_0 : i32, i32
  }
  func.func @transform_3(%arg0: i32) -> (i32, i32) {
    %c0_i32 = arith.constant 0 : i32
    %c0_i32_0 = arith.constant 0 : i32
    %c0_i32_1 = arith.constant 0 : i32
    return %c0_i32, %c0_i32_0 : i32, i32
  }
  func.func @transform_4(%arg0: i32) -> (i32, i32) {
    %c0_i32 = arith.constant 0 : i32
    %c0_i32_0 = arith.constant 0 : i32
    %c0_i32_1 = arith.constant 0 : i32
    return %c0_i32, %c0_i32_0 : i32, i32
  }
  func.func @transform_5(%arg0: i32) -> (i32, i32) {
    %c0_i32 = arith.constant 0 : i32
    %c0_i32_0 = arith.constant 0 : i32
    %c0_i32_1 = arith.constant 0 : i32
    return %c0_i32, %c0_i32_0 : i32, i32
  }
  func.func @transform_6(%arg0: i32) -> (i32, i32) {
    %c0_i32 = arith.constant 0 : i32
    %c0_i32_0 = arith.constant 0 : i32
    %c0_i32_1 = arith.constant 0 : i32
    return %c0_i32, %c0_i32_0 : i32, i32
  }
  func.func @transform_7(%arg0: i32) -> (i32, i32) {
    %c0_i32 = arith.constant 0 : i32
    %c0_i32_0 = arith.constant 0 : i32
    %c0_i32_1 = arith.constant 0 : i32
    return %c0_i32, %c0_i32_0 : i32, i32
  }
  func.func @transform_8(%arg0: i32) -> (i32, i32) {
    %c0_i32 = arith.constant 0 : i32
    %c0_i32_0 = arith.constant 0 : i32
    %c0_i32_1 = arith.constant 0 : i32
    return %c0_i32, %c0_i32_0 : i32, i32
  }
  func.func @transform_9(%arg0: i32) -> (i32, i32) {
    %c0_i32 = arith.constant 0 : i32
    %c0_i32_0 = arith.constant 0 : i32
    return %arg0, %c0_i32 : i32, i32
  }
}

</mosaic_0001>

<bundles_post_ra>
// kernel: custom_net_forward.1
= control target key start
LH: loop header
LB: loop body
LE: loop exit
PB: predicated region body
PF: predicated region fallthrough
CT: control target
= control target key end

     0   :  { %14 = vsyncpa [#allocation3], 0  ;;  %s1781_s0 = inlined_call_operand.vmem [shape: bf16[16,64], index: 0, kind: input, shape index: {}]   ;;  %s1782_s1 = inlined_call_operand.hbm [shape: bf16[64,512], index: 1, kind: input, shape index: {}]   ;;  %s1783_s2 = inlined_call_operand.vmem [shape: f32[1,512], index: 2, kind: input, shape index: {}]   ;;  %s1784_s3 = inlined_call_operand.hbm [shape: bf16[512,128], index: 3, kind: input, shape index: {}]   ;;  %s1785_s4 = inlined_call_operand.vmem [shape: f32[1,128], index: 4, kind: input, shape index: {}]   ;;  %s1786_s5 = inlined_call_operand.vmem [shape: bf16[128,128], index: 5, kind: input, shape index: {}]   ;;  %s1787_s6 = inlined_call_operand.vmem [shape: f32[1,128], index: 6, kind: input, shape index: {}]   ;;  %s1788_s7 = inlined_call_operand.hbm [shape: bf16[128,128], index: 7, kind: input, shape index: {}]   ;;  %s1789_s8 = inlined_call_operand.vmem [shape: f32[1,128], index: 8, kind: input, shape index: {}]   ;;  %s1790_s9 = inlined_call_operand.vmem [shape: bf16[16,128], index: 9, kind: output, shape index: {}]  }
   0x1   :  { %15 = vsyncpa [#allocation5], 0  ;;  %s1675_s30 = smov 0  }
   0x2 LB: > { %s274_s12 = sshll.u32 %s1784_s3, 4  ;;  %s1684_s13 = sadd.s32 4294967295, %s1616_s30   ;;  %s1616_s30 = sphi %s1675_s30, %s21_s30   ;;  %s275_s12 = int_to_ptr.hbm [resolvable:$true] %s274_s12 }
   0x3   : > { %p1125_p0 = scmp.ge.s32.totalorder %s1616_s30, 1  ;;  %p246_p1 = scmp.lt.s32.totalorder %s1616_s30, 3 }
   0x4   : > { %p1484_p2 = scmp.eq.s32.totalorder %s1684_s13, 0  ;;  %s1618_s15 = smov [#allocation4]  }
   0x5   : > { %p1689_p3 = pnand %p1125_p0, %p246_p1  ;;  %s276_s16 = sshll.u32 %s1618_s15, 4  ;;  %s277_s16 = int_to_ptr.vmem [resolvable:$true] %s276_s16 }
   0x6   : > { %s257_s19 = sshll.u32 %s1782_s1, 4  ;;  %s1619_s21 = smov [#allocation2]   ;;  %s258_s19 = int_to_ptr.hbm [resolvable:$true] %s257_s19 }
   0x7   : > { %p1474_p4 = pneg %p1689_p3  ;;  %s259_s22 = sshll.u32 %s1619_s21, 4  ;;  %s260_s22 = int_to_ptr.vmem [resolvable:$true] %s259_s22 }
   0x8   : > { %s1620_s23 = smov 64   ;;  %s1621_s24 = smov 4  }
   0x9   : > { %p1700_p5 = pnand %p1484_p2, %p1474_p4  ;;  %s297_s27 = sshll.u32 %s1788_s7, 4  ;;  %s298_s27 = int_to_ptr.hbm [resolvable:$true] %s297_s27 }
   0xa   : > { %s1622_s28 = smov 256   ;;  %s1623_s29 = smov 16  }
   0xb   : > { %1480 = dma.hbm_to_vmem [thread:$0]  (!%p1700_p5), %s275_s12, 4096, %s277_s16, [#allocation5], %s1620_s23, %s1620_s23, %s1621_s24  }
   0xc   : > { %1477 = dma.hbm_to_vmem [thread:$0]  (!%p1700_p5), %s258_s19, 2048, %s260_s22, [#allocation3], %s1622_s28, %s1622_s28, %s1623_s29  }
   0xd   : > { %s1624_s10 = smov [#allocation6]   ;;  %325 = sbr.rel (%p1689_p3) target bundleno = 849 (0x351), region = 56 }
   0xe   : > { %s299_s11 = sshll.u32 %s1624_s10, 4  ;;  %s300_s11 = int_to_ptr.vmem [resolvable:$true] %s299_s11 }
   0xf   : > { %1483 = dma.hbm_to_vmem [thread:$0]  (!%p1700_p5), %s298_s27, 1024, %s300_s11, [#allocation5], %s1620_s23, %s1620_s23, %s1621_s24  }
  0x12   : > { %1607 = dma.done.wait (%p1484_p2), [#allocation3], 2048  }
  0x13   : > { %1609 = vsyncadd (%p1484_p2), [#allocation3], 4294965248 }
  0x14   : > { %1611 = dma.done.wait (%p1484_p2), [#allocation5], 5120  }
  0x15   : > { %1613 = vsyncadd (%p1484_p2), [#allocation5], 4294962176  ;;  %p370_p6 = scmp.lt.s32.totalorder %s1684_s13, 1  ;;  %v1186_v0 = vld [vmem:[#allocation2 + $0x60] sm:$0xf]  ;;  %v1421_v27 = vld [vmem:[#allocation4 + $0x38] sm:$0xff] }
  0x16   : > { %v1412_v1 = vld [vmem:[#allocation2 + $0x6c] sm:$0xf0]  ;;  %v1410_v2 = vld [vmem:[#allocation2 + $0x64] sm:$0xf]  ;;  %v1188_v4 = vld [vmem:[#allocation2 + $0x70] sm:$0xf0]  ;;  %810 = vmatpush.bf16.msra.mxu0 %v1421_v27 }
  0x17   : > { %v1187_v3 = vor.u32 %v1412_v1, %v1186_v0  ;;  %v1170_v5 = vld [vmem:[#allocation2 + $0x40] sm:$0xf]  ;;  %v1408_v6 = vld [vmem:[#allocation2 + $0x4c] sm:$0xf0]  ;;  %v1191_v7 = vor.u32 %v1410_v2, %v1188_v4  ;;  %v1406_v8 = vld [vmem:[#allocation2 + $0x44] sm:$0xf] }
  0x18   : > { %v1172_v9 = vld [vmem:[#allocation2 + $0x50] sm:$0xf0]  ;;  %v1171_v10 = vor.u32 %v1408_v6, %v1170_v5  ;;  %s1794_s13 = smov (!%p370_p6, %s1684_s13), 1  ;;  %v1154_v12 = vld [vmem:[#allocation2 + $0x20] sm:$0xf]  ;;  %v1429_v28 = vld [vmem:[#allocation4 + $0x78] sm:$0xff] }
  0x19   : > { %494 = vmatpush.bf16.msra.mxu2 %v1187_v3  ;;  %507 = vmatpush.bf16.msra.mxu3 %v1191_v7  ;;  %v1175_v11 = vor.u32 %v1406_v8, %v1172_v9  ;;  %v1404_v13 = vld [vmem:[#allocation2 + $0x2c] sm:$0xf0]  ;;  %v1402_v14 = vld [vmem:[#allocation2 + $0x24] sm:$0xf]  ;;  %v1156_v15 = vld [vmem:[#allocation2 + $0x30] sm:$0xf0] }
  0x1a   : > { %v1155_v16 = vor.u32 %v1404_v13, %v1154_v12  ;;  %s1134_s12 = sshll.u32 %s1794_s13, 2  ;;  %v1159_v17 = vor.u32 %v1402_v14, %v1156_v15  ;;  %v1138_v18 = vld [vmem:[#allocation2] sm:$0xf]  ;;  %v1400_v19 = vld [vmem:[#allocation2 + $0xc] sm:$0xf0]  ;;  %823 = vmatpush.bf16.msra.mxu1 %v1429_v28  ;;  %vm486_vm0 = vcmask 523264  }
  0x1b   : > { %v1398_v20 = vld [vmem:[#allocation2 + $0x4] sm:$0xf]  ;;  %v1140_v21 = vld [vmem:[#allocation2 + $0x10] sm:$0xf0]  ;;  %v1194_v22 = vld [vmem:[#allocation2 + $0x68] sm:$0xf]  ;;  %v1139_v26 = vor.u32 %v1400_v19, %v1138_v18  ;;  %s373_s16 = scalar_lea.vmem %s1781_s0, %s1134_s12  ;;  %s377_s25 = scalar_lea.vmem %s1790_s9, %s1134_s12 }
  0x1c   : > { %v1413_v23 = vld [vmem:[#allocation2 + $0x74] sm:$0xf0]  ;;  %v1411_v24 = vld [vmem:[#allocation2 + $0x6c] sm:$0xf]  ;;  %v1196_v25 = vld [vmem:[#allocation2 + $0x78] sm:$0xf0]  ;;  %v1143_v29 = vor.u32 %v1398_v20, %v1140_v21 }
  0x1d   : > { %495 = vmatpush.bf16.msra.mxu2 %v1171_v10  ;;  %508 = vmatpush.bf16.msra.mxu3 %v1175_v11  ;;  %v1195_v30 = vor.u32 %v1413_v23, %v1194_v22  ;;  %v1199_v31 = vor.u32 %v1411_v24, %v1196_v25  ;;  %v1178_v32 = vld [vmem:[#allocation2 + $0x48] sm:$0xf]  ;;  %v1409_v33 = vld [vmem:[#allocation2 + $0x54] sm:$0xf0]  ;;  %v1420_v34 = vld [vmem:[#allocation4 + $0x30] sm:$0xff] }
  0x1e   : > { %v1407_v35 = vld [vmem:[#allocation2 + $0x4c] sm:$0xf]  ;;  %v1180_v36 = vld [vmem:[#allocation2 + $0x58] sm:$0xf0]  ;;  %v1428_v37 = vld [vmem:[#allocation4 + $0x70] sm:$0xff]  ;;  %v1179_v39 = vor.u32 %v1409_v33, %v1178_v32  ;;  %811 = vmatpush.bf16.msra.mxu0 %v1420_v34 }
  0x1f   : > { %v379_v38 = vld [vmem:[%s373_s16] sm:$0xf]  ;;  %v1162_v40 = vld [vmem:[#allocation2 + $0x28] sm:$0xf]  ;;  %v1405_v41 = vld [vmem:[#allocation2 + $0x34] sm:$0xf0]  ;;  %v1183_v42 = vor.u32 %v1407_v35, %v1180_v36  ;;  %824 = vmatpush.bf16.msra.mxu1 %v1428_v37 }
  0x20   : > { %v1419_v43 = vld [vmem:[#allocation4 + $0x28] sm:$0xff]  ;;  %v1164_v45 = vld [vmem:[#allocation2 + $0x38] sm:$0xf0]  ;;  %v1163_v47 = vor.u32 %v1405_v41, %v1162_v40  ;;  %v1401_v50 = vld [vmem:[#allocation2 + $0x14] sm:$0xf0] }
  0x21   : > { %496 = vmatpush.bf16.msra.mxu2 %v1155_v16  ;;  %509 = vmatpush.bf16.msra.mxu3 %v1159_v17  ;;  %v1403_v44 = vld [vmem:[#allocation2 + $0x2c] sm:$0xf]  ;;  %v1146_v49 = vld [vmem:[#allocation2 + $0x8] sm:$0xf]  ;;  %v1418_v51 = vld [vmem:[#allocation4 + $0x20] sm:$0xff] }
  0x22   : > { %v1427_v46 = vld [vmem:[#allocation4 + $0x68] sm:$0xff]  ;;  %v1167_v48 = vor.u32 %v1403_v44, %v1164_v45  ;;  %812 = vmatpush.bf16.msra.mxu0 %v1419_v43  ;;  %v1148_v53 = vld [vmem:[#allocation2 + $0x18] sm:$0xf0]  ;;  %v1426_v54 = vld [vmem:[#allocation4 + $0x60] sm:$0xff]  ;;  %v1147_v55 = vor.u32 %v1401_v50, %v1146_v49 }
  0x23   : > { %v1399_v52 = vld [vmem:[#allocation2 + $0xc] sm:$0xf]  ;;  %825 = vmatpush.bf16.msra.mxu1 %v1427_v46  ;;  %v1417_v57 = vld [vmem:[#allocation4 + $0x18] sm:$0xff]  ;;  %v1416_v61 = vld [vmem:[#allocation4 + $0x10] sm:$0xff] }
  0x24   : > { %v1151_v56 = vor.u32 %v1399_v52, %v1148_v53  ;;  %v1425_v58 = vld [vmem:[#allocation4 + $0x58] sm:$0xff]  ;;  %v1424_v62 = vld [vmem:[#allocation4 + $0x50] sm:$0xff]  ;;  %v1415_v1 = vld [vmem:[#allocation4 + $0x8] sm:$0xff] }
  0x25   : > { %497 = vmatpush.bf16.msra.mxu2 %v1139_v26  ;;  %510 = vmatpush.bf16.msra.mxu3 %v1143_v29  ;;  %v1437_v59 = vld [vmem:[#allocation4 + $0xb8] sm:$0xff]  ;;  %v1436_v63 = vld [vmem:[#allocation4 + $0xb0] sm:$0xff]  ;;  %v1423_v2 = vld [vmem:[#allocation4 + $0x48] sm:$0xff] }
  0x26   : > { %813 = vmatpush.bf16.msra.mxu0 %v1418_v51  ;;  %v1445_v60 = vld [vmem:[#allocation4 + $0xf8] sm:$0xff]  ;;  %v1444_v0 = vld [vmem:[#allocation4 + $0xf0] sm:$0xff]  ;;  %v1435_v3 = vld [vmem:[#allocation4 + $0xa8] sm:$0xff] }
  0x27   : > { %826 = vmatpush.bf16.msra.mxu1 %v1426_v54  ;;  %v1443_v4 = vld [vmem:[#allocation4 + $0xe8] sm:$0xff]  ;;  %v1414_v5 = vld [vmem:[#allocation4] sm:$0xff]  ;;  %v1433_v9 = vld [vmem:[#allocation4 + $0x98] sm:$0xff] }
  0x28   : > { %1200 = vmatmul.msk.bf16.vlgmr.msra.gmra.mxu2 %vm486_vm0, %v379_v38  ;;  %1201 = vmatmul.msk.bf16.vlgmr.msra.gmra.mxu3 %vm486_vm0, %v379_v38  ;;  %v1422_v6 = vld [vmem:[#allocation4 + $0x40] sm:$0xff]  ;;  %v1441_v10 = vld [vmem:[#allocation4 + $0xd8] sm:$0xff]  ;;  %v1432_v11 = vld [vmem:[#allocation4 + $0x90] sm:$0xff] }
  0x29   : > { %520 = vmatpush.bf16.msrb.mxu2 %v1195_v30  ;;  %533 = vmatpush.bf16.msrb.mxu3 %v1199_v31  ;;  %v1434_v7 = vld [vmem:[#allocation4 + $0xa0] sm:$0xff]  ;;  %v1440_v12 = vld [vmem:[#allocation4 + $0xd0] sm:$0xff]  ;;  %v1431_v13 = vld [vmem:[#allocation4 + $0x88] sm:$0xff] }
  0x2a   : > { %814 = vmatpush.bf16.msra.mxu0 %v1417_v57  ;;  %v1442_v8 = vld [vmem:[#allocation4 + $0xe0] sm:$0xff]  ;;  %v1439_v14 = vld [vmem:[#allocation4 + $0xc8] sm:$0xff]  ;;  %v1452_v43 = vld [vmem:[%s1786_s5 + $0x30] sm:$0xff] }
  0x2b   : > { %827 = vmatpush.bf16.msra.mxu1 %v1425_v58  ;;  %v1430_v15 = vld [vmem:[#allocation4 + $0x80] sm:$0xff]  ;;  %v1451_v44 = vld [vmem:[%s1786_s5 + $0x28] sm:$0xff]  ;;  %v1449_v46 = vld [vmem:[%s1786_s5 + $0x18] sm:$0xff] }
  0x2c   : > { %v1438_v16 = vld [vmem:[#allocation4 + $0xc0] sm:$0xff]  ;;  %v1461_v50 = vld [vmem:[#allocation6 + $0x38] sm:$0xff]  ;;  %v1460_v53 = vld [vmem:[#allocation6 + $0x30] sm:$0xff] }
  0x2d   : > { %521 = vmatpush.bf16.msrb.mxu2 %v1179_v39  ;;  %534 = vmatpush.bf16.msrb.mxu3 %v1183_v42  ;;  %v396_v17 = vld [vmem:[%s1783_s2] sm:$0xf]  ;;  %v1453_v42 = vld [vmem:[%s1786_s5 + $0x38] sm:$0xff]  ;;  %v1459_v54 = vld [vmem:[#allocation6 + $0x28] sm:$0xff] }
  0x2e   : > { %815 = vmatpush.bf16.msra.mxu0 %v1416_v61  ;;  %v398_v18 = vperm.slane %v396_v17, 0  ;;  %v399_v19 = vperm.slane %v396_v17, 1  ;;  %v400_v30 = vperm.slane %v396_v17, 2  ;;  %v401_v31 = vperm.slane %v396_v17, 3  ;;  %v1450_v45 = vld [vmem:[%s1786_s5 + $0x20] sm:$0xff]  ;;  %v1456_v61 = vld [vmem:[#allocation6 + $0x10] sm:$0xff] }
  0x2f   : > { %828 = vmatpush.bf16.msra.mxu1 %v1424_v62  ;;  %v1446_v49 = vld [vmem:[%s1786_s5] sm:$0xff] }
  0x30   : > { %v1458_v57 = vld [vmem:[#allocation6 + $0x20] sm:$0xff] }
  0x31   : > { %522 = vmatpush.bf16.msrb.mxu2 %v1163_v47  ;;  %535 = vmatpush.bf16.msrb.mxu3 %v1167_v48  ;;  %v1448_v47 = vld [vmem:[%s1786_s5 + $0x10] sm:$0xff]  ;;  %v1447_v48 = vld [vmem:[%s1786_s5 + $0x8] sm:$0xff]  ;;  %v1505_v58 = vld [vmem:[%s1785_s4] ss:$0 sm:$0xff] }
  0x32   : > { %816 = vmatpush.bf16.msra.mxu0 %v1415_v1 }
  0x33   : > { %829 = vmatpush.bf16.msra.mxu1 %v1423_v2 }
  0x35   : > { %523 = vmatpush.bf16.msrb.mxu2 %v1147_v55  ;;  %536 = vmatpush.bf16.msrb.mxu3 %v1151_v56 }
  0x36   : > { %817 = vmatpush.bf16.msra.mxu0 %v1414_v5 }
  0x37   : > { %830 = vmatpush.bf16.msra.mxu1 %v1422_v6 }
  0x38   : > { %1202 = vmatmul.msk.bf16.vlgmr.msrb.gmra.mxu2 %vm486_vm0, %v379_v38  ;;  %1203 = vmatmul.msk.bf16.vlgmr.msrb.gmra.mxu3 %vm486_vm0, %v379_v38 }
  0x39   : > { %836 = vmatpush.bf16.msra.mxu2 %v1437_v59  ;;  %849 = vmatpush.bf16.msra.mxu3 %v1445_v60  ;;  %v1457_v59 = vld [vmem:[#allocation6 + $0x18] sm:$0xff] }
  0x3a   : > { %932 = vmatpush.bf16.msrb.mxu0 %v1453_v42 }
  0x3b   : > { %1015 = vmatpush.bf16.msrb.mxu1 %v1461_v50 }
  0x3d   : > { %837 = vmatpush.bf16.msra.mxu2 %v1436_v63  ;;  %850 = vmatpush.bf16.msra.mxu3 %v1444_v0 }
  0x3e   : > { %933 = vmatpush.bf16.msrb.mxu0 %v1452_v43 }
  0x3f   : > { %1016 = vmatpush.bf16.msrb.mxu1 %v1460_v53 }
  0x41   : > { %838 = vmatpush.bf16.msra.mxu2 %v1435_v3  ;;  %851 = vmatpush.bf16.msra.mxu3 %v1443_v4 }
  0x42   : > { %934 = vmatpush.bf16.msrb.mxu0 %v1451_v44 }
  0x43   : > { %1017 = vmatpush.bf16.msrb.mxu1 %v1459_v54 }
  0x45   : > { %839 = vmatpush.bf16.msra.mxu2 %v1434_v7  ;;  %852 = vmatpush.bf16.msra.mxu3 %v1442_v8  ;;  %v1455_v7 = vld [vmem:[#allocation6 + $0x8] sm:$0xff]  ;;  %v1454_v8 = vld [vmem:[#allocation6] sm:$0xff] }
  0x46   : > { %935 = vmatpush.bf16.msrb.mxu0 %v1450_v45 }
  0x47   : > { %1018 = vmatpush.bf16.msrb.mxu1 %v1458_v57 }
  0x49   : > { %840 = vmatpush.bf16.msra.mxu2 %v1433_v9  ;;  %853 = vmatpush.bf16.msra.mxu3 %v1441_v10  ;;  %v1506_v9 = vld [vmem:[%s1787_s6] ss:$0 sm:$0xff] }
  0x4a   : > { %936 = vmatpush.bf16.msrb.mxu0 %v1449_v46 }
  0x4b   : > { %1019 = vmatpush.bf16.msrb.mxu1 %v1457_v59 }
  0x4d   : > { %841 = vmatpush.bf16.msra.mxu2 %v1432_v11  ;;  %854 = vmatpush.bf16.msra.mxu3 %v1440_v12 }
  0x4e   : > { %937 = vmatpush.bf16.msrb.mxu0 %v1448_v47 }
  0x4f   : > { %1020 = vmatpush.bf16.msrb.mxu1 %v1456_v61 }
  0x51   : > { %842 = vmatpush.bf16.msra.mxu2 %v1431_v13  ;;  %855 = vmatpush.bf16.msra.mxu3 %v1439_v14 }
  0x52   : > { %938 = vmatpush.bf16.msrb.mxu0 %v1447_v48 }
  0x53   : > { %1021 = vmatpush.bf16.msrb.mxu1 %v1455_v7 }
  0x55   : > { %843 = vmatpush.bf16.msra.mxu2 %v1430_v15  ;;  %856 = vmatpush.bf16.msra.mxu3 %v1438_v16  ;;  %v1507_v15 = vld [vmem:[%s1789_s8] ss:$0 sm:$0xff] }
  0x56   : > { %939 = vmatpush.bf16.msrb.mxu0 %v1446_v49 }
  0x57   : > { %1022 = vmatpush.bf16.msrb.mxu1 %v1454_v8 }
  0xab   : > { %v499_v20 = vpop.f32.mrf.mxu2  ;;  %v512_v22 = vpop.f32.mrf.mxu3 }
  0xac   : > { %v500_v21 = vadd.f32 %v499_v20, %v398_v18  ;;  %v513_v23 = vadd.f32 %v512_v22, %v399_v19 }
  0xae   : > { %v542_v24 = vmax.f32 %v500_v21, 0.0  ;;  %v543_v25 = vmax.f32 %v513_v23, 0.0 }
  0xb0   : > { %v546_v26 = vpack.c.bf16 %v542_v24, %v542_v24  ;;  %v547_v27 = vpack.c.bf16 %v543_v25, %v543_v25 }
  0xb2   : > { %818 = vmatmul.bf16.vlgmr.msra.gmra.mxu0 %v546_v26  ;;  %831 = vmatmul.bf16.vlgmr.msra.gmra.mxu1 %v547_v27 }
  0xb3   : > { %v501_v28 = vpop.f32.mrf.mxu2  ;;  %v514_v29 = vpop.f32.mrf.mxu3 }
  0xbb   : > { %v525_v32 = vpop.f32.mrf.mxu2  ;;  %v538_v34 = vpop.f32.mrf.mxu3 }
  0xbc   : > { %v526_v33 = vadd.f32 %v525_v32, %v400_v30  ;;  %v539_v35 = vadd.f32 %v538_v34, %v401_v31 }
  0xbe   : > { %v544_v36 = vmax.f32 %v526_v33, 0.0  ;;  %v545_v37 = vmax.f32 %v539_v35, 0.0 }
  0xc0   : > { %v548_v38 = vpack.c.bf16 %v544_v36, %v544_v36  ;;  %v549_v39 = vpack.c.bf16 %v545_v37, %v545_v37 }
  0xc2   : > { %844 = vmatmul.bf16.vlgmr.msra.gmra.mxu2 %v548_v38  ;;  %857 = vmatmul.bf16.vlgmr.msra.gmra.mxu3 %v549_v39 }
  0xc3   : > { %v527_v40 = vpop.f32.mrf.mxu2  ;;  %v540_v41 = vpop.f32.mrf.mxu3 }
 0x12f   : > { %v819_v51 = vpop.f32.mrf.mxu0  ;;  %v832_v52 = vpop.f32.mrf.mxu1 }
 0x130   : > { %v820_v60 = vadd.f32 %v1505_v58, %v819_v51 }
 0x132   : > { %v833_v62 = vadd.f32 %v832_v52, %v820_v60 }
 0x137   : > { %v821_v55 = vpop.f32.mrf.mxu0  ;;  %v834_v56 = vpop.f32.mrf.mxu1 }
 0x145   : > { %v845_v63 = vpop.f32.mrf.mxu2  ;;  %v858_v1 = vpop.f32.mrf.mxu3 }
 0x146   : > { %v846_v0 = vadd.f32 %v845_v63, %v833_v62 }
 0x148   : > { %v859_v2 = vadd.f32 %v858_v1, %v846_v0 }
 0x14a   : > { %v862_v3 = vmax.f32 %v859_v2, 0.0 }
 0x14c   : > { %v863_v4 = vpack.c.bf16 %v862_v3, %v862_v3 }
 0x14d   : > { %v847_v5 = vpop.f32.mrf.mxu2  ;;  %v860_v6 = vpop.f32.mrf.mxu3 }
 0x14e   : > { %940 = vmatmul.bf16.vlgmr.msrb.gmra.mxu0 %v863_v4 }
 0x1cb   : > { %v941_v10 = vpop.f32.mrf.mxu0 }
 0x1cc   : > { %v942_v11 = vadd.f32 %v1506_v9, %v941_v10 }
 0x1ce   : > { %v945_v12 = vmax.f32 %v942_v11, 0.0 }
 0x1d0   : > { %v946_v13 = vpack.c.bf16 %v945_v12, %v945_v12 }
 0x1d2   : > { %1023 = vmatmul.bf16.vlgmr.msrb.gmra.mxu1 %v946_v13 }
 0x1d3   : > { %v943_v14 = vpop.f32.mrf.mxu0 }
 0x24f   : > { %v1024_v16 = vpop.f32.mrf.mxu1 }
 0x250   : > { %v1025_v17 = vadd.f32 %v1507_v15, %v1024_v16 }
 0x252   : > { %1028 = vmax.xlane.f32.xlu0 %v1025_v17 }
 0x257   : > { %v1026_v18 = vpop.f32.mrf.mxu1 }
 0x2c5   : > { %v1029_v19 = vpop.xlane.xlu0 %1028 }
 0x2c6   : > { %v1030_v20 = vsub.f32 %v1025_v17, %v1029_v19 }
 0x2c8   : > { %v1031_v21 = vmul.f32 1.442695, %v1030_v20 }
 0x2ca   : > { %1508 = vpow2.f32 %v1031_v21 }
 0x2d0   : > { %v1509_v22 = vpop.eup %1508 }
 0x2d1   : > { %1033 = vadd.xlane.f32.xlu0 %v1509_v22 }
 0x344   : > { %v1034_v23 = vpop.xlane.xlu0 %1033 }
 0x345   : > { %1510 = vrcp.f32 %v1034_v23 }
 0x34b   : > { %v1511_v24 = vpop.eup %1510 }
 0x34c   : > { %v1036_v25 = vmul.f32 %v1511_v24, %v1509_v22 }
 0x34e   : > { %v1037_v26 = vpack.c.bf16 %v1036_v25, %v1036_v25 }
 0x350   : > { %1038 = vst [vmem:[%s377_s25] sm:$0xf] %v1037_v26 }
 0x351 PF: > { %s21_s30 = sadd.s32 1, %s1616_s30  }
 0x352   : > { %p18_p7 = scmp.ge.s32.totalorder %s21_s30, 4  }
 0x354   :  { %20 = sbr.rel (!%p18_p7) target bundleno = 2 (0x2), region = 99 }
 0x359   :  { %1058 = vsyncpa [#allocation3], 1 }
 0x35a   :  { %1060 = vsyncpa [#allocation3 + $0x1], 1 }
 0x35b   :  { %1061 = vsyncpa [#allocation5], 1 }

</bundles_post_ra>
